<compile_context>
chip_gen: v7x
topology: tpu7x:2x2x1
jax: 0.10.0
libtpu: 0.0.40
codegen_flags: <defaults>
</compile_context>

<pallas_src>
import jax
import jax.numpy as jnp
from jax import lax
from jax.experimental import pallas as pl
from jax.experimental.pallas import tpu as pltpu

_EPS = 1e-5


def _round_up(x, m):
    return (x + m - 1) // m * m


def _cdiv(a, b):
    return (a + b - 1) // b


def _centroid_dist_kernel(node_ref, sqx_ref, mask_ref, cent_ref, sqc_ref, invc_ref,
                          graph_ref, node_dist_ref):
    ni = pl.program_id(1)                       # node-tile index ("arbitrary", reduction)

    @pl.when(ni == 0)
    def _init():
        graph_ref[...] = jnp.zeros_like(graph_ref)

    x = node_ref[...]                           # [TM, D]   (dot dtype)
    mask = mask_ref[...]                        # [TM, 1]   f32
    sq_x = sqx_ref[...]                         # [TM, 1]   f32, pre-clipped in wrapper
    sq_c = sqc_ref[...]                         # [1, TC]   f32, pre-clipped in wrapper
    inv_c = invc_ref[...]                       # [1, TC]   f32 = 1/(1-|c|^2) (0 in padding)

    inv_x2 = 2.0 * pl.reciprocal(1.0 - sq_x, approx=False)                    # [TM, 1]

    # Pairwise dot on the MXU, canonical [M,K]x[K,N] layout (centroids pre-transposed).
    xc = lax.dot_general(x, cent_ref[...],
                         dimension_numbers=(((1,), (0,)), ((), ())),
                         preferred_element_type=jnp.float32)                  # [TM, TC]
    sqdist = jnp.maximum(sq_x + sq_c - 2.0 * xc, 0.0)                         # [TM, TC]

    # Poincare distance, factored arcosh: arcosh(1+t) = log(1 + t + sqrt(t*(t+2))).
    # Avoids the z*z-1 cancellation of log(z + sqrt(z^2-1)) for z ~ 1.
    zm1 = sqdist * inv_x2 * inv_c
    d = jnp.log(1.0 + zm1 + jnp.sqrt(zm1 * (zm1 + 2.0)))                      # [TM, TC]

    masked = d * mask                                                         # [TM, TC] f32
    node_dist_ref[...] = masked.astype(node_dist_ref.dtype)

    # Graph reduction across node tiles: row-sum on the MXU (ones[1,TM] @ masked).
    ones_m = jnp.ones((1, masked.shape[0]), jnp.float32)
    graph_ref[...] += lax.dot_general(ones_m, masked,
                                      dimension_numbers=(((1,), (0,)), ((), ())),
                                      preferred_element_type=jnp.float32)     # [1, TC]


def centroid_distance(node_repr, centroids, mask, *, block_n=1024, block_c=1024,
                      dot_dtype=jnp.float32, out_dtype=jnp.float32):
    """node_repr: [N, D]; centroids: [C, D]; mask: [N, 1] (float).

    Returns (graph_centroid_dist [1, C], node_centroid_dist [1, N, C]).
    """
    n, d = node_repr.shape
    c, d2 = centroids.shape
    assert d == d2 and mask.shape == (n, 1)
    f32 = jnp.float32

    node_f32 = node_repr.astype(f32)
    cent_f32 = centroids.astype(f32)
    mask_f32 = mask.astype(f32)

    # Hoisted norms (stay f32 regardless of dot_dtype).
    sq_x = jnp.clip(jnp.sum(node_f32 * node_f32, axis=-1, keepdims=True), 0.0, 1.0 - _EPS)
    sq_c = jnp.clip(jnp.sum(cent_f32 * cent_f32, axis=-1), 0.0, 1.0 - _EPS)   # [C]
    inv_c = 1.0 / (1.0 - sq_c)                                                # [C]

    # --- tile selection: balance tiles and minimize padding ---
    block_n = max(8, _round_up(block_n, 8))
    block_c = max(128, _round_up(block_c, 128))
    tm = _round_up(_cdiv(n, _cdiv(n, block_n)), 8)
    n_pad = _round_up(n, tm)
    c128 = _round_up(c, 128)
    n_ct = _cdiv(c128, block_c)
    if c128 >= 256:
        n_ct = max(n_ct, 2)          # >= 2 blocks on the 'parallel' axis -> both v7x TCs busy
    tc = _round_up(_cdiv(c128, n_ct), 128)
    c_pad = _round_up(c128, tc)

    # Padded inputs (D is NOT padded: full-dim blocks are exempt from the 128 rule).
    # TODO(synk): set dot_dtype=jnp.bfloat16 for large D once validated for near-boundary
    # embeddings (norms and all post-matmul math stay f32 either way).
    node_p = jnp.zeros((n_pad, d), dot_dtype).at[:n, :].set(node_f32.astype(dot_dtype))
    cent_p = jnp.zeros((d, c_pad), dot_dtype).at[:, :c].set(cent_f32.T.astype(dot_dtype))
    sqx_p = jnp.zeros((n_pad, 1), f32).at[:n, :].set(sq_x)
    mask_p = jnp.zeros((n_pad, 1), f32).at[:n, :].set(mask_f32)
    sqc_p = jnp.zeros((1, c_pad), f32).at[0, :c].set(sq_c)
    invc_p = jnp.zeros((1, c_pad), f32).at[0, :c].set(inv_c)   # 0 in padded cols -> d = 0

    grid = (c_pad // tc, n_pad // tm)            # (centroid tiles "parallel", node tiles "arbitrary")

    # VMEM budget: double-buffered tiles + headroom, capped at ~75% of physical VMEM.
    in_b = jnp.dtype(dot_dtype).itemsize
    out_b = jnp.dtype(out_dtype).itemsize
    est = (2 * (tm * d * in_b + 2 * tm * 4 + d * tc * in_b + 2 * tc * 4)   # inputs
           + 2 * (tc * 4 + tm * tc * out_b))                               # outputs
    try:
        vmem_cap = int(getattr(pltpu.get_tpu_info(), "vmem_capacity_bytes", 64 << 20))
    except Exception:
        vmem_cap = 64 << 20
    vmem_limit = int(min(max(2 * est + (4 << 20), 32 << 20), vmem_cap - vmem_cap // 4))

    graph_p, node_dist_p = pl.pallas_call(
        _centroid_dist_kernel,
        out_shape=(
            jax.ShapeDtypeStruct((1, c_pad), f32),
            jax.ShapeDtypeStruct((n_pad, c_pad), out_dtype),
        ),
        grid_spec=pltpu.PrefetchScalarGridSpec(
            num_scalar_prefetch=0,
            grid=grid,
            in_specs=[
                pl.BlockSpec((tm, d), lambda ci, ni: (ni, 0)),     # node tile
                pl.BlockSpec((tm, 1), lambda ci, ni: (ni, 0)),     # |u|^2
                pl.BlockSpec((tm, 1), lambda ci, ni: (ni, 0)),     # mask
                pl.BlockSpec((d, tc), lambda ci, ni: (0, ci)),     # centroids [D, TC]
                pl.BlockSpec((1, tc), lambda ci, ni: (0, ci)),     # |c|^2
                pl.BlockSpec((1, tc), lambda ci, ni: (0, ci)),     # 1/(1-|c|^2)
            ],
            out_specs=(
                pl.BlockSpec((1, tc), lambda ci, ni: (0, ci)),     # graph (accumulated over ni)
                pl.BlockSpec((tm, tc), lambda ci, ni: (ni, ci)),   # node_dist (lane-dense)
            ),
        ),
        compiler_params=pltpu.CompilerParams(
            dimension_semantics=("parallel", "arbitrary"),
            vmem_limit_bytes=vmem_limit,
        ),
    )(node_p, sqx_p, mask_p, cent_p, sqc_p, invc_p)

    # Glue: divide by global mask sum (all-zero mask -> inf/NaN, same as PyTorch) and
    # strip padding only when it actually exists.
    graph_dist = graph_p if c_pad == c else graph_p[:, :c]
    graph_dist = graph_dist / jnp.sum(mask_f32)
    if n_pad == n and c_pad == c:
        node_dist = node_dist_p.reshape(1, n, c)
    else:
        node_dist = node_dist_p[:n, :c].reshape(1, n, c)
    return graph_dist, node_dist


def _reference(node_repr, centroids, mask):
    # Pure-JAX reference mirroring the PyTorch code (expand + per-pair distance).
    u = node_repr[:, None, :]                       # [N, 1, D]
    v = centroids[None, :, :]                       # [1, C, D]
    sq_u = jnp.clip(jnp.sum(node_repr**2, -1), 0.0, 1.0 - _EPS)[:, None]
    sq_v = jnp.clip(jnp.sum(centroids**2, -1), 0.0, 1.0 - _EPS)[None, :]
    sqdist = jnp.sum((u - v) ** 2, -1)
    z = sqdist / ((1.0 - sq_u) * (1.0 - sq_v)) * 2.0 + 1.0
    d = jnp.log(z + jnp.sqrt(jnp.maximum(z * z - 1.0, 0.0)))
    node_dist = (d * mask)[None]                    # [1, N, C]
    graph_dist = jnp.sum(node_dist, axis=1) / jnp.sum(mask)
    return graph_dist, node_dist


if __name__ == "__main__":
    key = jax.random.PRNGKey(0)
    k_node, k_cent, k_node2, k_cent2 = jax.random.split(key, 4)

    # --- Test 1: module-sized shapes (node_num=16, num_centroid=8, embed_size=32). ---
    N, C, D = 16, 8, 32
    centroids = jax.random.uniform(k_cent, (C, D), jnp.float32, -1e-2, 1e-2)
    node_repr = jax.random.normal(k_node, (N, D), jnp.float32) * 0.05
    mask = jnp.concatenate(
        [jnp.ones((N - 3, 1), jnp.float32), jnp.zeros((3, 1), jnp.float32)], axis=0
    )

    graph_dist, node_dist = centroid_distance(node_repr, centroids, mask)
    jax.block_until_ready((graph_dist, node_dist))

    ref_graph, ref_node = _reference(node_repr, centroids, mask)
    assert graph_dist.shape == (1, C)
    assert node_dist.shape == (1, N, C)
    assert jnp.allclose(node_dist, ref_node, atol=1e-4, rtol=1e-4)
    assert jnp.allclose(graph_dist, ref_graph, atol=1e-4, rtol=1e-4)

    # --- Test 2: exercises the 2-D grid (2 centroid tiles x 3 node tiles), balanced-tile
    # padding, and the cross-node-tile graph accumulation. ---
    N2, C2, D2 = 300, 200, 48
    centroids2 = jax.random.uniform(k_cent2, (C2, D2), jnp.float32, -1e-2, 1e-2)
    node_repr2 = jax.random.normal(k_node2, (N2, D2), jnp.float32) * 0.05
    mask2 = jnp.concatenate(
        [jnp.ones((N2 - 17, 1), jnp.float32), jnp.zeros((17, 1), jnp.float32)], axis=0
    )

    graph2, node2 = centroid_distance(node_repr2, centroids2, mask2,
                                      block_n=128, block_c=128)
    jax.block_until_ready((graph2, node2))

    ref_graph2, ref_node2 = _reference(node_repr2, centroids2, mask2)
    assert graph2.shape == (1, C2)
    assert node2.shape == (1, N2, C2)
    assert jnp.allclose(node2, ref_node2, atol=1e-4, rtol=1e-4)
    assert jnp.allclose(graph2, ref_graph2, atol=1e-4, rtol=1e-4)

    print("KERNEL_OK")
</pallas_src>

<mosaic_0001>
module attributes {stable_mosaic.version = 11 : i64} {
  func.func @_centroid_dist_kernel(%arg0: i32, %arg1: i32, %arg2: memref<16x32xf32, #tpu.memory_space<vmem>>, %arg3: memref<16x1xf32, #tpu.memory_space<vmem>>, %arg4: memref<16x1xf32, #tpu.memory_space<vmem>>, %arg5: memref<32x128xf32, #tpu.memory_space<vmem>>, %arg6: memref<1x128xf32, #tpu.memory_space<vmem>>, %arg7: memref<1x128xf32, #tpu.memory_space<vmem>>, %arg8: memref<1x128xf32, #tpu.memory_space<vmem>>, %arg9: memref<16x128xf32, #tpu.memory_space<vmem>>) attributes {dimension_semantics = [#tpu.dimension_semantics<parallel>, #tpu.dimension_semantics<arbitrary>], iteration_bounds = array<i64: 1, 1>, scalar_prefetch = 0 : i64, scratch_operands = 0 : i64, tpu.core_type = #tpu.core_type<tc>, window_params = [{transform_indices = @transform_0, window_bounds = array<i64: 16, 32>}, {transform_indices = @transform_1, window_bounds = array<i64: 16, 1>}, {transform_indices = @transform_2, window_bounds = array<i64: 16, 1>}, {transform_indices = @transform_3, window_bounds = array<i64: 32, 128>}, {transform_indices = @transform_4, window_bounds = array<i64: 1, 128>}, {transform_indices = @transform_5, window_bounds = array<i64: 1, 128>}, {transform_indices = @transform_6, window_bounds = array<i64: 1, 128>}, {transform_indices = @transform_7, window_bounds = array<i64: 16, 128>}]} {
    %c0_i32 = arith.constant 0 : i32
    %0 = arith.cmpi eq, %arg1, %c0_i32 : i32
    %1 = arith.extui %0 : i1 to i32
    %c0_i32_0 = arith.constant 0 : i32
    %2 = arith.cmpi ne, %1, %c0_i32_0 : i32
    scf.if %2 {
      %cst_26 = arith.constant 0.000000e+00 : f32
      %43 = vector.broadcast %cst_26 : f32 to vector<1x128xf32>
      %c0_27 = arith.constant 0 : index
      %c0_28 = arith.constant 0 : index
      %44 = vector.load %arg8[%c0_27, %c0_28] : memref<1x128xf32, #tpu.memory_space<vmem>>, vector<1x128xf32>
      tpu.vector_store %arg8[%c0_27, %c0_28], %43 {strides = array<i32>} : memref<1x128xf32, #tpu.memory_space<vmem>>, vector<1x128xf32>,
    } else {
    }
    %c0 = arith.constant 0 : index
    %c0_1 = arith.constant 0 : index
    %3 = vector.load %arg2[%c0, %c0_1] : memref<16x32xf32, #tpu.memory_space<vmem>>, vector<16x32xf32>
    %c0_2 = arith.constant 0 : index
    %c0_3 = arith.constant 0 : index
    %4 = vector.load %arg4[%c0_2, %c0_3] : memref<16x1xf32, #tpu.memory_space<vmem>>, vector<16x1xf32>
    %c0_4 = arith.constant 0 : index
    %c0_5 = arith.constant 0 : index
    %5 = vector.load %arg3[%c0_4, %c0_5] : memref<16x1xf32, #tpu.memory_space<vmem>>, vector<16x1xf32>
    %c0_6 = arith.constant 0 : index
    %c0_7 = arith.constant 0 : index
    %6 = vector.load %arg6[%c0_6, %c0_7] : memref<1x128xf32, #tpu.memory_space<vmem>>, vector<1x128xf32>
    %c0_8 = arith.constant 0 : index
    %c0_9 = arith.constant 0 : index
    %7 = vector.load %arg7[%c0_8, %c0_9] : memref<1x128xf32, #tpu.memory_space<vmem>>, vector<1x128xf32>
    %cst = arith.constant 1.000000e+00 : f32
    %8 = vector.broadcast %cst : f32 to vector<16x1xf32>
    %9 = arith.subf %8, %5 : vector<16x1xf32>
    %10 = tpu.reciprocal %9 : vector<16x1xf32> -> vector<16x1xf32>
    %cst_10 = arith.constant 2.000000e+00 : f32
    %11 = vector.broadcast %cst_10 : f32 to vector<16x1xf32>
    %12 = arith.mulf %11, %10 : vector<16x1xf32>
    %c0_11 = arith.constant 0 : index
    %c0_12 = arith.constant 0 : index
    %13 = vector.load %arg5[%c0_11, %c0_12] : memref<32x128xf32, #tpu.memory_space<vmem>>, vector<32x128xf32>
    %cst_13 = arith.constant dense<0.000000e+00> : vector<16x128xf32>
    %14 = tpu.matmul %3, %13, %cst_13 {dimension_numbers = #tpu.dot_dimension_numbers<[1], [0], [0], [1], [0, 0, 1, 1], [], []>} : vector<16x32xf32>, vector<32x128xf32>, vector<16x128xf32> -> vector<16x128xf32>
    %15 = vector.broadcast %5 : vector<16x1xf32> to vector<16x128xf32>
    %16 = vector.broadcast %6 : vector<1x128xf32> to vector<16x128xf32>
    %17 = arith.addf %15, %16 : vector<16x128xf32>
    %cst_14 = arith.constant 2.000000e+00 : f32
    %18 = vector.broadcast %cst_14 : f32 to vector<16x128xf32>
    %19 = arith.mulf %18, %14 : vector<16x128xf32>
    %20 = arith.subf %17, %19 : vector<16x128xf32>
    %cst_15 = arith.constant 0.000000e+00 : f32
    %21 = vector.broadcast %cst_15 : f32 to vector<16x128xf32>
    %22 = arith.maximumf %20, %21 : vector<16x128xf32>
    %23 = vector.broadcast %12 : vector<16x1xf32> to vector<16x128xf32>
    %24 = arith.mulf %22, %23 : vector<16x128xf32>
    %25 = vector.broadcast %7 : vector<1x128xf32> to vector<16x128xf32>
    %26 = arith.mulf %24, %25 : vector<16x128xf32>
    %cst_16 = arith.constant 1.000000e+00 : f32
    %27 = vector.broadcast %cst_16 : f32 to vector<16x128xf32>
    %28 = arith.addf %27, %26 : vector<16x128xf32>
    %cst_17 = arith.constant 2.000000e+00 : f32
    %29 = vector.broadcast %cst_17 : f32 to vector<16x128xf32>
    %30 = arith.addf %26, %29 : vector<16x128xf32>
    %31 = arith.mulf %26, %30 : vector<16x128xf32>
    %32 = math.sqrt %31 : vector<16x128xf32>
    %33 = arith.addf %28, %32 : vector<16x128xf32>
    %34 = math.log %33 : vector<16x128xf32>
    %35 = vector.broadcast %4 : vector<16x1xf32> to vector<16x128xf32>
    %36 = arith.mulf %34, %35 : vector<16x128xf32>
    %c0_18 = arith.constant 0 : index
    %c0_19 = arith.constant 0 : index
    %37 = vector.load %arg9[%c0_18, %c0_19] : memref<16x128xf32, #tpu.memory_space<vmem>>, vector<16x128xf32>
    tpu.vector_store %arg9[%c0_18, %c0_19], %36 {strides = array<i32>} : memref<16x128xf32, #tpu.memory_space<vmem>>, vector<16x128xf32>,
    %cst_20 = arith.constant 1.000000e+00 : f32
    %38 = vector.broadcast %cst_20 : f32 to vector<1x16xf32>
    %c0_21 = arith.constant 0 : index
    %c0_22 = arith.constant 0 : index
    %39 = vector.load %arg8[%c0_21, %c0_22] : memref<1x128xf32, #tpu.memory_space<vmem>>, vector<1x128xf32>
    %cst_23 = arith.constant dense<0.000000e+00> : vector<1x128xf32>
    %40 = tpu.matmul %38, %36, %cst_23 {dimension_numbers = #tpu.dot_dimension_numbers<[1], [0], [0], [1], [0, 0, 1, 1], [], []>} : vector<1x16xf32>, vector<16x128xf32>, vector<1x128xf32> -> vector<1x128xf32>
    %41 = arith.addf %39, %40 : vector<1x128xf32>
    %c0_24 = arith.constant 0 : index
    %c0_25 = arith.constant 0 : index
    %42 = vector.load %arg8[%c0_24, %c0_25] : memref<1x128xf32, #tpu.memory_space<vmem>>, vector<1x128xf32>
    tpu.vector_store %arg8[%c0_24, %c0_25], %41 {strides = array<i32>} : memref<1x128xf32, #tpu.memory_space<vmem>>, vector<1x128xf32>,
    return
  }
  func.func @transform_0(%arg0: i32, %arg1: i32) -> (i32, i32) {
    %c0_i32 = arith.constant 0 : i32
    %c0_i32_0 = arith.constant 0 : i32
    return %arg1, %c0_i32 : i32, i32
  }
  func.func @transform_1(%arg0: i32, %arg1: i32) -> (i32, i32) {
    %c0_i32 = arith.constant 0 : i32
    %c0_i32_0 = arith.constant 0 : i32
    return %arg1, %c0_i32 : i32, i32
  }
  func.func @transform_2(%arg0: i32, %arg1: i32) -> (i32, i32) {
    %c0_i32 = arith.constant 0 : i32
    %c0_i32_0 = arith.constant 0 : i32
    return %arg1, %c0_i32 : i32, i32
  }
  func.func @transform_3(%arg0: i32, %arg1: i32) -> (i32, i32) {
    %c0_i32 = arith.constant 0 : i32
    %c0_i32_0 = arith.constant 0 : i32
    return %c0_i32, %arg0 : i32, i32
  }
  func.func @transform_4(%arg0: i32, %arg1: i32) -> (i32, i32) {
    %c0_i32 = arith.constant 0 : i32
    %c0_i32_0 = arith.constant 0 : i32
    return %c0_i32, %arg0 : i32, i32
  }
  func.func @transform_5(%arg0: i32, %arg1: i32) -> (i32, i32) {
    %c0_i32 = arith.constant 0 : i32
    %c0_i32_0 = arith.constant 0 : i32
    return %c0_i32, %arg0 : i32, i32
  }
  func.func @transform_6(%arg0: i32, %arg1: i32) -> (i32, i32) {
    %c0_i32 = arith.constant 0 : i32
    %c0_i32_0 = arith.constant 0 : i32
    return %c0_i32, %arg0 : i32, i32
  }
  func.func @transform_7(%arg0: i32, %arg1: i32) -> (i32, i32) {
    %c0_i32 = arith.constant 0 : i32
    return %arg1, %arg0 : i32, i32
  }
}

</mosaic_0001>

<bundles_post_ra>
// kernel: tpu_custom_call.1
= control target key start
LH: loop header
LB: loop body
LE: loop exit
PB: predicated region body
PF: predicated region fallthrough
CT: control target
= control target key end

     0   :  { %13 = vsyncpa [#allocation3], 0  ;;  %s601_s0 = inlined_call_operand.hbm [shape: f32[16,32], index: 0, kind: input, shape index: {}]   ;;  %s602_s1 = inlined_call_operand.vmem [shape: f32[16,1], index: 1, kind: input, shape index: {}]   ;;  %s603_s2 = inlined_call_operand.vmem [shape: f32[16,1], index: 2, kind: input, shape index: {}]   ;;  %s604_s3 = inlined_call_operand.vmem [shape: f32[32,128], index: 3, kind: input, shape index: {}]   ;;  %s605_s4 = inlined_call_operand.vmem [shape: f32[1,128], index: 4, kind: input, shape index: {}]   ;;  %s606_s5 = inlined_call_operand.vmem [shape: f32[1,128], index: 5, kind: input, shape index: {}]   ;;  %s607_s6 = inlined_call_operand.hbm [shape: f32[1,128], index: 6, kind: output, shape index: {0}]   ;;  %s608_s7 = inlined_call_operand.hbm [shape: f32[16,128], index: 7, kind: output, shape index: {1}]  }
   0x1   :  { %14 = vsyncpa [#allocation4], 0 }
   0x2   :  { %15 = vsyncpa [#allocation7], 0  ;;  %s477_s24 = smov [#allocation2]   ;;  %s405_s28 = scalar_lea.hbm %s601_s0, 256 }
   0x3   :  { %s21_s25 = sshll.u32 %s477_s24, 4  ;;  %p406_p0 = scmp.ne.s32.totalorder %s601_s0, %s405_s28  ;;  %s22_s25 = int_to_ptr.vmem [resolvable:$true] %s21_s25 }
   0x4   :  { %p409_p1 = scmp.lt.u32.totalorder %s405_s28, %s601_s0 }
   0x6   :  { %p411_p2 = pnand %p409_p1, %p406_p0 }
   0x8   :  { %414 = shalt.err (!%p411_p2)
}
   0x9   :  { %s415_s10 = scalar_lea.vmem %s22_s25, 256  ;;  %p420_p4 = scmp.lt.s32.totalorder %s22_s25, %s22_s25 }
   0xa   :  { %p416_p3 = scmp.ne.s32.totalorder %s22_s25, %s415_s10  ;;  %p421_p5 = scmp.lt.s32.totalorder %s415_s10, %s415_s10 }
   0xc   :  { %p422_p6 = por %p421_p5, %p420_p4 }
   0xe   :  { %p423_p7 = pnand %p422_p6, %p416_p3 }
  0x10   :  { %426 = shalt.err (!%p423_p7)
}
  0x11   :  { %s478_s11 = smov 128   ;;  %s479_s12 = smov 8  }
  0x12   :  { %27 = dma.hbm_to_vmem [thread:$0]  %s601_s0, 256, %s22_s25, [#allocation3], %s478_s11, %s478_s11, %s479_s12  }
  0x13   :  { %471 = dma.done.wait [#allocation3], 256  }
  0x14   :  { %472 = vsyncadd [#allocation3], 4294967040  ;;  %v480_v0 = vmov 0   ;;  %vm64_vm0 = vcmask 261120   ;;  %v60_v1 = vld [vmem:[%s604_s3] sm:$0xff]  ;;  %v61_v2 = vld [vmem:[%s604_s3 + $0x8] sm:$0xff] }
  0x15   :  { %391 = vset.pattern.permute.xlu0 %v480_v0  ;;  %392 = vset.pattern.permute.xlu1 %v480_v0  ;;  %v62_v3 = vld [vmem:[%s604_s3 + $0x10] sm:$0xff]  ;;  %v370_v4 = vpack.c.bf16 %v61_v2, %v60_v1  ;;  %v63_v5 = vld [vmem:[%s604_s3 + $0x18] sm:$0xff]  ;;  %v46_v6 = vld [vmem:[#allocation2] sm:$0xff]  ;;  %v481_v19 = vmov 0.0|0.0   ;;  %v482_v20 = vmov 0.0   ;;  %vm483_vm1 = vmmov 0  }
  0x16   :  { %v374_v7 = vpack.c.bf16 %v63_v5, %v62_v3  ;;  %360 = vmatprep.mubr.msk.f32.mxu0 %vm64_vm0, %v46_v6  ;;  %v50_v8 = vld [vmem:[%s602_s1] sm:$0xff]  ;;  %v51_v9 = vld [vmem:[%s602_s1 + $0x8] sm:$0xff]  ;;  %378 = vmatprep.subr.bf16.mxu1 %v481_v19  ;;  %45 = vst [vmem:[#allocation5] sm:$0x1] %v482_v20  ;;  %vm231_vm6 = vcmask 130048  }
  0x17   :  { %371 = vmatprep.subr.bf16.mxu0 %v370_v4  ;;  %148 = vperm.xlu0 %391, %v50_v8   ;;  %v54_v10 = vsub.f32 1.0, %v50_v8  ;;  %v55_v11 = vsub.f32 1.0, %v51_v9  ;;  %v47_v12 = vld [vmem:[#allocation2 + $0x8] sm:$0xff]  ;;  %v48_v13 = vld [vmem:[%s603_s2] sm:$0xff] }
  0x18   :  { %373 = vmatpush3.bf16.msra.mxu0 %v370_v4  ;;  %v49_v18 = vld [vmem:[%s603_s2 + $0x8] sm:$0xff]  ;;  %367 = vmatprep.mubr.msk.f32.mxu1 %vm483_vm1, %v482_v20  ;;  %v340_v22 = vld [vmem:[%s605_s4] ss:$0 sm:$0xff]  ;;  %v484_v4 = vmov 1.0   ;;  %s485_s4 = smov [#allocation6]  }
  0x19   :  { %375 = vmatprep.subr.bf16.mxu0 %v374_v7  ;;  %393 = vrcp.f32 %v54_v10  ;;  %v341_v35 = vld [vmem:[%s606_s5] ss:$0 sm:$0xff]  ;;  %s322_s5 = sshll.u32 %s485_s4, 4  ;;  %s323_s5 = int_to_ptr.vmem [resolvable:$true] %s322_s5 }
  0x1a   :  { %395 = vrcp.f32 %v55_v11  ;;  %s427_s8 = scalar_lea.vmem %s323_s5, 256  ;;  %p432_p9 = scmp.lt.s32.totalorder %s323_s5, %s323_s5 }
  0x1b   :  { %153 = vperm.xlu0 %391, %v51_v9   ;;  %p428_p8 = scmp.ne.s32.totalorder %s323_s5, %s427_s8  ;;  %p433_p10 = scmp.lt.s32.totalorder %s427_s8, %s427_s8 }
  0x1c   :  { %377 = vmatpush3.bf16.msra.mxu0 %v374_v7 }
  0x1d   :  { %p434_p11 = por %p433_p10, %p432_p9 }
  0x1f   :  { %361 = vmatmul.mubr.msk.f32.vlgmr.msra.gmra.mrb[0].mxu0 %vm64_vm0, %v47_v12  ;;  %218 = vperm.xlu0 %391, %v48_v13   ;;  %p435_p12 = pnand %p434_p11, %p428_p8 }
  0x23   :  { %v394_v14 = vpop.eup %393 }
  0x24   :  { %v396_v15 = vpop.eup %395  ;;  %v58_v16 = vmul.f32 2.0, %v394_v14 }
  0x25   :  { %v59_v17 = vmul.f32 2.0, %v396_v15 }
  0x26   :  { %172 = vperm.xlu1 %392, %v58_v16  }
  0x2a   :  { %177 = vperm.xlu1 %392, %v59_v17  }
  0x2e   :  { %223 = vperm.xlu1 %392, %v49_v18  }
  0x96   :  { %v149_v21 = vpop.permute.xlu0 %148 }
  0x97   :  { %v162_v29 = vadd.f32 %v340_v22, %v149_v21 }
  0x9a   :  { %v154_v23 = vpop.permute.xlu0 %153 }
  0x9b   :  { %v163_v26 = vadd.f32 %v340_v22, %v154_v23 }
  0x9e   :  { %v219_v0 = vpop.permute.xlu0 %218 }
  0xa5   :  { %v173_v24 = vpop.permute.xlu1 %172 }
  0xa9   :  { %v178_v34 = vpop.permute.xlu1 %177 }
  0xad   :  { %v224_v62 = vpop.permute.xlu1 %223 }
  0xf2   :  { %v362_v25 = vpop.f32.mrb[0].mxu0 }
  0xf3   :  { %v165_v27 = vmul.f32 2.0, %v362_v25  ;;  %v137_v28 = vpop.f32.mrb[1].mxu0 }
  0xf4   :  { %v164_v30 = vmul.f32 2.0, %v137_v28 }
  0xf5   :  { %v167_v31 = vsub.f32 %v163_v26, %v165_v27 }
  0xf6   :  { %v166_v32 = vsub.f32 %v162_v29, %v164_v30 }
  0xf7   :  { %v169_v33 = vmax.f32 %v167_v31, 0.0 }
  0xf8   :  { %v168_v36 = vmax.f32 %v166_v32, 0.0 }
  0xf9   :  { %v181_v37 = vmul.f32 %v178_v34, %v169_v33 }
  0xfa   :  { %v180_v38 = vmul.f32 %v173_v24, %v168_v36 }
  0xfb   :  { %v189_v39 = vmul.f32 %v341_v35, %v181_v37 }
  0xfc   :  { %v188_v40 = vmul.f32 %v341_v35, %v180_v38 }
  0xfd   :  { %v193_v41 = vadd.f32 2.0, %v189_v39  ;;  %v191_v48 = vadd.f32 1.0, %v189_v39 }
  0xfe   :  { %v192_v42 = vadd.f32 2.0, %v188_v40  ;;  %v190_v54 = vadd.f32 1.0, %v188_v40 }
  0xff   :  { %v195_v43 = vmul.f32 %v193_v41, %v189_v39 }
 0x100   :  { %v194_v44 = vmul.f32 %v192_v42, %v188_v40 }
 0x101   :  { %397 = vrsqrt.f32 %v195_v43  ;;  %vm205_vm2 = vcmp.eq.f32.partialorder %v195_v43, inf  ;;  %v208_v49 = vand.u32 2147483648, %v195_v43  ;;  %vm207_vm3 = vcmp.eq.f32.partialorder %v195_v43, 0.0 }
 0x102   :  { %399 = vrsqrt.f32 %v194_v44  ;;  %vm198_vm4 = vcmp.eq.f32.partialorder %v194_v44, inf  ;;  %v201_v52 = vand.u32 2147483648, %v194_v44  ;;  %vm200_vm5 = vcmp.eq.f32.partialorder %v194_v44, 0.0 }
 0x10b   :  { %v398_v45 = vpop.eup %397 }
 0x10c   :  { %v400_v46 = vpop.eup %399  ;;  %v204_v47 = vmul.f32 %v398_v45, %v195_v43 }
 0x10d   :  { %v197_v50 = vmul.f32 %v400_v46, %v194_v44 }
 0x10e   :  { %v206_v51 = vsel %vm205_vm2, %v195_v43, %v204_v47 }
 0x10f   :  { %v209_v53 = vsel %vm207_vm3, %v208_v49, %v206_v51  ;;  %v199_v55 = vsel %vm198_vm4, %v194_v44, %v197_v50 }
 0x110   :  { %v211_v56 = vadd.f32 %v209_v53, %v191_v48  ;;  %v202_v57 = vsel %vm200_vm5, %v201_v52, %v199_v55 }
 0x111   :  { %v210_v58 = vadd.f32 %v202_v57, %v190_v54 }
 0x112   :  { %401 = vlog2.f32 %v211_v56 }
 0x113   :  { %403 = vlog2.f32 %v210_v58 }
 0x11c   :  { %v402_v59 = vpop.eup %401 }
 0x11d   :  { %v404_v60 = vpop.eup %403  ;;  %v215_v61 = vmul.f32 0.6931472, %v402_v59 }
 0x11e   :  { %v213_v63 = vmul.f32 0.6931472, %v404_v60 }
 0x11f   :  { %v227_v1 = vmul.f32 %v224_v62, %v215_v61 }
 0x120   :  { %v226_v2 = vmul.f32 %v219_v0, %v213_v63 }
 0x121   :  { %229 = vst [vmem:[#allocation6 + $0x8] sm:$0xff] %v227_v1 }
 0x122   :  { %v379_v3 = vpack.c.bf16 %v227_v1, %v226_v2  ;;  %228 = vst [vmem:[#allocation6] sm:$0xff] %v226_v2 }
 0x124   :  { %380 = vmatpush3.bf16.msra.mxu1 %v379_v3 }
 0x127   :  { %368 = vmatmul.mubr.msk.f32.vlgmr.msra.gmra.mrb[0].mxu1 %vm231_vm6, %v484_v4 }
 0x128   :  { %438 = shalt.err (!%p435_p12)
}
 0x129   :  { %s439_s13 = scalar_lea.hbm %s608_s7, 256 }
 0x12a   :  { %p440_p13 = scmp.ne.s32.totalorder %s608_s7, %s439_s13  ;;  %p443_p0 = scmp.lt.u32.totalorder %s439_s13, %s608_s7 }
 0x12c   :  { %p445_p1 = pnand %p443_p0, %p440_p13 }
 0x12e   :  { %448 = shalt.err (!%p445_p1)
}
 0x12f   :  { %328 = dma.vmem_to_hbm [thread:$0]  %s323_s5, 256, %s608_s7, [#allocation7], %s478_s11, %s478_s11, %s479_s12   ;;  %v230_v5 = vld [vmem:[#allocation5] sm:$0x1] }
 0x130   :  { %s486_s20 = smov [#allocation5]  }
 0x131   :  { %s313_s0 = sshll.u32 %s486_s20, 4  ;;  %s314_s0 = int_to_ptr.vmem [resolvable:$true] %s313_s0 }
 0x132   :  { %s449_s21 = scalar_lea.vmem %s314_s0, 16  ;;  %s453_s22 = scalar_lea.vmem %s314_s0, 32 }
 0x133   :  { %p450_p2 = scmp.ne.s32.totalorder %s314_s0, %s449_s21  ;;  %p454_p3 = scmp.lt.s32.totalorder %s314_s0, %s314_s0 }
 0x134   :  { %p455_p4 = scmp.lt.s32.totalorder %s453_s22, %s449_s21 }
 0x136   :  { %p456_p5 = por %p455_p4, %p454_p3 }
 0x138   :  { %p457_p6 = pnand %p456_p5, %p450_p2 }
 0x1fa   :  { %v301_v6 = vpop.f32.mrb[0].mxu1 }
 0x1fb   :  { %v305_v7 = vadd.f32 %v301_v6, %v230_v5  ;;  %v369_v8 = vpop.f32.mrb[1].mxu1 }
 0x1fd   :  { %306 = vst [vmem:[#allocation5] sm:$0x1] %v305_v7 }
 0x1fe   :  { %460 = shalt.err (!%p457_p6)
}
 0x1ff   :  { %s461_s7 = scalar_lea.hbm %s607_s6, 16 }
 0x200   :  { %p462_p7 = scmp.ne.s32.totalorder %s607_s6, %s461_s7  ;;  %p465_p8 = scmp.lt.u32.totalorder %s461_s7, %s607_s6 }
 0x202   :  { %p467_p9 = pnand %p465_p8, %p462_p7 }
 0x204   :  { %470 = shalt.err (!%p467_p9)
}
 0x205   :  { %316 = dma.vmem_to_hbm [thread:$0]  %s314_s0, 16, %s607_s6, [#allocation4]  }
 0x206   :  { %473 = dma.done.wait [#allocation4], 16  }
 0x207   :  { %474 = vsyncadd [#allocation4], 4294967280 }
 0x208   :  { %475 = dma.done.wait [#allocation7], 256  }
 0x209   :  { %476 = vsyncadd [#allocation7], 4294967040 }
 0x20a   :  { %335 = vsyncpa [#allocation3], 1 }
 0x20b   :  { %336 = vsyncpa [#allocation4], 1 }
 0x20c   :  { %337 = vsyncpa [#allocation7], 1 }

</bundles_post_ra>
